<compile_context>
chip_gen: v5e
topology: v5e:2x2
jax: 0.10.0
libtpu: 0.0.40
codegen_flags: <defaults>
</compile_context>

<pallas_src>
import functools

import jax
import jax.numpy as jnp
from jax.experimental import pallas as pl
from jax.experimental.pallas import tpu as pltpu


def attention_kernel(q_ref, k_ref, v_ref,
                     wqt_ref, wk_ref, wvt_ref,
                     bq_ref, bk_ref, bv_ref,
                     o_ref, *, mxu_dtype):
    """One B-tile: query projection + folded-Wk scores + softmax + deferred Wv."""
    q = q_ref[...]            # (bB, D)  fp32
    keys = k_ref[...]         # (bB, M, D) fp32 (raw keys, never projected)
    vals = v_ref[...]         # (bB, M, D) fp32 (raw values, never projected)

    wqt = wqt_ref[...]        # (D, D) = Wq.T
    wk = wk_ref[...]          # (D, D) = Wk (NOT transposed; used as qt @ Wk)
    wvt = wvt_ref[...]        # (D, D) = Wv.T
    bq = bq_ref[...]          # (1, D)
    bk = bk_ref[...]          # (1, D)
    bv = bv_ref[...]          # (1, D)

    # Query projection and folding of Wk into the query side: two small DxD
    # MXU matmuls with fp32 accumulation (operands optionally bf16 on v6e/v7x).
    qt = jnp.dot(q.astype(mxu_dtype), wqt.astype(mxu_dtype),
                 preferred_element_type=jnp.float32) + bq              # (bB, D)
    q2 = jnp.dot(qt.astype(mxu_dtype), wk.astype(mxu_dtype),
                 preferred_element_type=jnp.float32)                   # (bB, D)
    sb = jnp.sum(qt * bk, axis=-1, keepdims=True)                      # (bB, 1) = qt . bk

    # scores[b, m] = q2[b, :] . keys[b, m, :] + sb[b]
    # VPU broadcast-multiply + lane reduce; avoids 1-row-per-batch MXU matmuls.
    scores = jnp.sum(q2[:, None, :] * keys, axis=-1) + sb              # (bB, M) fp32

    # Softmax over the memory axis, all in fp32 (v5e: no bf16 VALU/EUP).
    s_max = jnp.max(scores, axis=-1, keepdims=True)
    p = jnp.exp(scores - s_max)                                        # (bB, M)
    denom = jnp.sum(p, axis=-1, keepdims=True)                         # (bB, 1)

    # Unnormalized weighted sum of RAW values; the 1/denom normalization is
    # folded afterwards onto the (bB, D) context (M-fold fewer multiplies).
    ctx = jnp.sum(p[:, :, None] * vals, axis=1)                        # (bB, D)
    # approx=True would move the reciprocal to the EUP slot, but its ~1e-3
    # relative error risks the fp32 1e-4 reference tolerance -> keep exact.
    ctx = ctx * pl.reciprocal(denom, approx=False)

    # Deferred value projection: exact because softmax weights sum to 1,
    # with the bias kept OUTSIDE the weighted sum.
    out = jnp.dot(ctx.astype(mxu_dtype), wvt.astype(mxu_dtype),
                  preferred_element_type=jnp.float32) + bv             # (bB, D)
    o_ref[...] = out.astype(o_ref.dtype)


def attention_forward(query, keys, values, params, *,
                      use_bf16_mxu=False, block_b=None,
                      vmem_limit_bytes=None, interpret=False):
    """Wrapper: parameter plumbing (transposes / bias reshape) + gridded pallas_call."""
    B, D = query.shape
    _, M, _ = keys.shape

    wq, bq = params["wq"], params["bq"]
    wk, bk = params["wk"], params["bk"]
    wv, bv = params["wv"], params["bv"]

    # B-tile: full batch when tiny, otherwise a multiple-of-8 sublane tile.
    if block_b is None:
        block_b = B if B <= 8 else min(256, (B // 8) * 8)
    grid = (pl.cdiv(B, block_b),)

    # Explicit VMEM budget: per-step block bytes (inputs are double-buffered by
    # BlockSpec) with headroom, kept well under v7x's 64 MiB physical VMEM.
    if vmem_limit_bytes is None:
        block_bytes = 4 * (2 * block_b * D            # query + output tiles
                           + 2 * block_b * M * D      # keys + values tiles
                           + 3 * D * D + 3 * D)       # weights + biases
        vmem_limit_bytes = int(min(64 * 1024 * 1024,
                                   max(16 * 1024 * 1024, 4 * block_bytes)))

    # Post-refactor cost: 3 DxD projections + 2 B*M*D contractions; exp per score.
    flops = 6 * B * D * D + 4 * B * M * D
    transcendentals = B * M
    bytes_accessed = 4 * (2 * B * D + 2 * B * M * D + 3 * D * D + 3 * D)

    mxu_dtype = jnp.bfloat16 if use_bf16_mxu else jnp.float32
    kernel = functools.partial(attention_kernel, mxu_dtype=mxu_dtype)

    return pl.pallas_call(
        kernel,
        out_shape=jax.ShapeDtypeStruct((B, D), jnp.float32),
        grid_spec=pltpu.PrefetchScalarGridSpec(
            num_scalar_prefetch=0,
            grid=grid,
            in_specs=[
                pl.BlockSpec((block_b, D), lambda i: (i, 0)),        # query
                pl.BlockSpec((block_b, M, D), lambda i: (i, 0, 0)),  # keys
                pl.BlockSpec((block_b, M, D), lambda i: (i, 0, 0)),  # values
                pl.BlockSpec((D, D), lambda i: (0, 0)),              # Wq.T
                pl.BlockSpec((D, D), lambda i: (0, 0)),              # Wk
                pl.BlockSpec((D, D), lambda i: (0, 0)),              # Wv.T
                pl.BlockSpec((1, D), lambda i: (0, 0)),              # bq
                pl.BlockSpec((1, D), lambda i: (0, 0)),              # bk
                pl.BlockSpec((1, D), lambda i: (0, 0)),              # bv
            ],
            out_specs=pl.BlockSpec((block_b, D), lambda i: (i, 0)),
        ),
        compiler_params=pltpu.CompilerParams(
            dimension_semantics=("parallel",),       # B axis -> both TCs on v7x
            vmem_limit_bytes=vmem_limit_bytes,
        ),
        cost_estimate=pl.CostEstimate(
            flops=flops,
            transcendentals=transcendentals,
            bytes_accessed=bytes_accessed,
        ),
        interpret=interpret,
    )(query, keys, values,
      wq.T, wk, wv.T,                                 # note: Wk passed UN-transposed
      bq.reshape(1, D), bk.reshape(1, D), bv.reshape(1, D))


def attention_reference(query, keys, values, params):
    """Plain-JAX reference mirroring the PyTorch forward (fp32 throughout)."""
    qt = query @ params["wq"].T + params["bq"]
    kt = keys @ params["wk"].T + params["bk"]
    vt = values @ params["wv"].T + params["bv"]
    scores = jnp.einsum('bd,bmd->bm', qt, kt)
    w = jax.nn.softmax(scores, axis=-1)
    return jnp.einsum('bm,bmd->bd', w, vt)


if __name__ == "__main__":
    B, M, D = 2, 8, 32  # batch, memory_size, feature_dim

    key = jax.random.PRNGKey(0)
    k_q, k_k, k_v, k_wq, k_wk, k_wv, k_bq, k_bk, k_bv = jax.random.split(key, 9)

    query = jax.random.normal(k_q, (B, D), dtype=jnp.float32)
    keys = jax.random.normal(k_k, (B, M, D), dtype=jnp.float32)
    values = jax.random.normal(k_v, (B, M, D), dtype=jnp.float32)

    # Deterministic parameter init (nn.Linear shapes: weight (D, D), bias (D,)).
    scale = 1.0 / jnp.sqrt(jnp.float32(D))
    params = {
        "wq": jax.random.normal(k_wq, (D, D), dtype=jnp.float32) * scale,
        "wk": jax.random.normal(k_wk, (D, D), dtype=jnp.float32) * scale,
        "wv": jax.random.normal(k_wv, (D, D), dtype=jnp.float32) * scale,
        "bq": jax.random.normal(k_bq, (D,), dtype=jnp.float32) * 0.1,
        "bk": jax.random.normal(k_bk, (D,), dtype=jnp.float32) * 0.1,
        "bv": jax.random.normal(k_bv, (D,), dtype=jnp.float32) * 0.1,
    }

    out = attention_forward(query, keys, values, params)
    out = jax.block_until_ready(out)

    ref = attention_reference(query, keys, values, params)
    assert out.shape == (B, D), out.shape
    max_err = float(jnp.max(jnp.abs(out - ref)))
    assert jnp.allclose(out, ref, atol=1e-4, rtol=1e-4), max_err

    print("KERNEL_OK")
</pallas_src>

<mosaic_0001>
module attributes {stable_mosaic.version = 11 : i64} {
  func.func @attention_kernel(%arg0: i32, %arg1: memref<2x32xf32, #tpu.memory_space<vmem>>, %arg2: memref<2x8x32xf32, #tpu.memory_space<vmem>>, %arg3: memref<2x8x32xf32, #tpu.memory_space<vmem>>, %arg4: memref<32x32xf32, #tpu.memory_space<vmem>>, %arg5: memref<32x32xf32, #tpu.memory_space<vmem>>, %arg6: memref<32x32xf32, #tpu.memory_space<vmem>>, %arg7: memref<1x32xf32, #tpu.memory_space<vmem>>, %arg8: memref<1x32xf32, #tpu.memory_space<vmem>>, %arg9: memref<1x32xf32, #tpu.memory_space<vmem>>, %arg10: memref<2x32xf32, #tpu.memory_space<vmem>>) attributes {dimension_semantics = [#tpu.dimension_semantics<parallel>], iteration_bounds = array<i64: 1>, scalar_prefetch = 0 : i64, scratch_operands = 0 : i64, tpu.core_type = #tpu.core_type<tc>, window_params = [{transform_indices = @transform_0, window_bounds = array<i64: 2, 32>}, {transform_indices = @transform_1, window_bounds = array<i64: 2, 8, 32>}, {transform_indices = @transform_2, window_bounds = array<i64: 2, 8, 32>}, {pipeline_mode = #tpu.pipeline_mode<synchronous>, transform_indices = @transform_3, window_bounds = array<i64: 32, 32>}, {pipeline_mode = #tpu.pipeline_mode<synchronous>, transform_indices = @transform_4, window_bounds = array<i64: 32, 32>}, {pipeline_mode = #tpu.pipeline_mode<synchronous>, transform_indices = @transform_5, window_bounds = array<i64: 32, 32>}, {pipeline_mode = #tpu.pipeline_mode<synchronous>, transform_indices = @transform_6, window_bounds = array<i64: 1, 32>}, {pipeline_mode = #tpu.pipeline_mode<synchronous>, transform_indices = @transform_7, window_bounds = array<i64: 1, 32>}, {pipeline_mode = #tpu.pipeline_mode<synchronous>, transform_indices = @transform_8, window_bounds = array<i64: 1, 32>}, {transform_indices = @transform_9, window_bounds = array<i64: 2, 32>}]} {
    %c0 = arith.constant 0 : index
    %c0_0 = arith.constant 0 : index
    %0 = vector.load %arg1[%c0, %c0_0] : memref<2x32xf32, #tpu.memory_space<vmem>>, vector<2x32xf32>
    %c0_1 = arith.constant 0 : index
    %c0_2 = arith.constant 0 : index
    %c0_3 = arith.constant 0 : index
    %1 = vector.load %arg2[%c0_1, %c0_2, %c0_3] : memref<2x8x32xf32, #tpu.memory_space<vmem>>, vector<2x8x32xf32>
    %c0_4 = arith.constant 0 : index
    %c0_5 = arith.constant 0 : index
    %c0_6 = arith.constant 0 : index
    %2 = vector.load %arg3[%c0_4, %c0_5, %c0_6] : memref<2x8x32xf32, #tpu.memory_space<vmem>>, vector<2x8x32xf32>
    %c0_7 = arith.constant 0 : index
    %c0_8 = arith.constant 0 : index
    %3 = vector.load %arg4[%c0_7, %c0_8] : memref<32x32xf32, #tpu.memory_space<vmem>>, vector<32x32xf32>
    %c0_9 = arith.constant 0 : index
    %c0_10 = arith.constant 0 : index
    %4 = vector.load %arg5[%c0_9, %c0_10] : memref<32x32xf32, #tpu.memory_space<vmem>>, vector<32x32xf32>
    %c0_11 = arith.constant 0 : index
    %c0_12 = arith.constant 0 : index
    %5 = vector.load %arg6[%c0_11, %c0_12] : memref<32x32xf32, #tpu.memory_space<vmem>>, vector<32x32xf32>
    %c0_13 = arith.constant 0 : index
    %c0_14 = arith.constant 0 : index
    %6 = vector.load %arg7[%c0_13, %c0_14] : memref<1x32xf32, #tpu.memory_space<vmem>>, vector<1x32xf32>
    %c0_15 = arith.constant 0 : index
    %c0_16 = arith.constant 0 : index
    %7 = vector.load %arg8[%c0_15, %c0_16] : memref<1x32xf32, #tpu.memory_space<vmem>>, vector<1x32xf32>
    %c0_17 = arith.constant 0 : index
    %c0_18 = arith.constant 0 : index
    %8 = vector.load %arg9[%c0_17, %c0_18] : memref<1x32xf32, #tpu.memory_space<vmem>>, vector<1x32xf32>
    %cst = arith.constant dense<0.000000e+00> : vector<2x32xf32>
    %9 = tpu.matmul %0, %3, %cst {dimension_numbers = #tpu.dot_dimension_numbers<[1], [0], [0], [1], [0, 0, 1, 1], [], []>} : vector<2x32xf32>, vector<32x32xf32>, vector<2x32xf32> -> vector<2x32xf32>
    %10 = vector.broadcast %6 : vector<1x32xf32> to vector<2x32xf32>
    %11 = arith.addf %9, %10 : vector<2x32xf32>
    %cst_19 = arith.constant dense<0.000000e+00> : vector<2x32xf32>
    %12 = tpu.matmul %11, %4, %cst_19 {dimension_numbers = #tpu.dot_dimension_numbers<[1], [0], [0], [1], [0, 0, 1, 1], [], []>} : vector<2x32xf32>, vector<32x32xf32>, vector<2x32xf32> -> vector<2x32xf32>
    %13 = vector.broadcast %7 : vector<1x32xf32> to vector<2x32xf32>
    %14 = arith.mulf %11, %13 : vector<2x32xf32>
    %cst_20 = arith.constant dense<0.000000e+00> : vector<2xf32>
    %15 = vector.multi_reduction <add>, %14, %cst_20 [1] : vector<2x32xf32> to vector<2xf32>
    %16 = vector.shape_cast %15 : vector<2xf32> to vector<2x1xf32>
    %17 = vector.shape_cast %12 : vector<2x32xf32> to vector<2x1x32xf32>
    %18 = vector.broadcast %17 : vector<2x1x32xf32> to vector<2x8x32xf32>
    %19 = arith.mulf %18, %1 : vector<2x8x32xf32>
    %cst_21 = arith.constant dense<0.000000e+00> : vector<2x8xf32>
    %20 = vector.multi_reduction <add>, %19, %cst_21 [2] : vector<2x8x32xf32> to vector<2x8xf32>
    %21 = vector.broadcast %16 : vector<2x1xf32> to vector<2x8xf32>
    %22 = arith.addf %20, %21 : vector<2x8xf32>
    %cst_22 = arith.constant dense<0xFF800000> : vector<2xf32>
    %23 = vector.multi_reduction <maximumf>, %22, %cst_22 [1] : vector<2x8xf32> to vector<2xf32>
    %24 = vector.shape_cast %23 : vector<2xf32> to vector<2x1xf32>
    %25 = vector.broadcast %24 : vector<2x1xf32> to vector<2x8xf32>
    %26 = arith.subf %22, %25 : vector<2x8xf32>
    %27 = math.exp %26 : vector<2x8xf32>
    %cst_23 = arith.constant dense<0.000000e+00> : vector<2xf32>
    %28 = vector.multi_reduction <add>, %27, %cst_23 [1] : vector<2x8xf32> to vector<2xf32>
    %29 = vector.shape_cast %28 : vector<2xf32> to vector<2x1xf32>
    %30 = vector.shape_cast %27 : vector<2x8xf32> to vector<2x8x1xf32>
    %31 = vector.broadcast %30 : vector<2x8x1xf32> to vector<2x8x32xf32>
    %32 = arith.mulf %31, %2 : vector<2x8x32xf32>
    %cst_24 = arith.constant dense<0.000000e+00> : vector<2x32xf32>
    %33 = vector.multi_reduction <add>, %32, %cst_24 [1] : vector<2x8x32xf32> to vector<2x32xf32>
    %34 = tpu.reciprocal %29 : vector<2x1xf32> -> vector<2x1xf32>
    %35 = vector.broadcast %34 : vector<2x1xf32> to vector<2x32xf32>
    %36 = arith.mulf %33, %35 : vector<2x32xf32>
    %cst_25 = arith.constant dense<0.000000e+00> : vector<2x32xf32>
    %37 = tpu.matmul %36, %5, %cst_25 {dimension_numbers = #tpu.dot_dimension_numbers<[1], [0], [0], [1], [0, 0, 1, 1], [], []>} : vector<2x32xf32>, vector<32x32xf32>, vector<2x32xf32> -> vector<2x32xf32>
    %38 = vector.broadcast %8 : vector<1x32xf32> to vector<2x32xf32>
    %39 = arith.addf %37, %38 : vector<2x32xf32>
    %c0_26 = arith.constant 0 : index
    %c0_27 = arith.constant 0 : index
    %40 = vector.load %arg10[%c0_26, %c0_27] : memref<2x32xf32, #tpu.memory_space<vmem>>, vector<2x32xf32>
    tpu.vector_store %arg10[%c0_26, %c0_27], %39 {strides = array<i32>} : memref<2x32xf32, #tpu.memory_space<vmem>>, vector<2x32xf32>,
    return
  }
  func.func @transform_0(%arg0: i32) -> (i32, i32) {
    %c0_i32 = arith.constant 0 : i32
    %c0_i32_0 = arith.constant 0 : i32
    return %arg0, %c0_i32 : i32, i32
  }
  func.func @transform_1(%arg0: i32) -> (i32, i32, i32) {
    %c0_i32 = arith.constant 0 : i32
    %c0_i32_0 = arith.constant 0 : i32
    %c0_i32_1 = arith.constant 0 : i32
    return %arg0, %c0_i32, %c0_i32_0 : i32, i32, i32
  }
  func.func @transform_2(%arg0: i32) -> (i32, i32, i32) {
    %c0_i32 = arith.constant 0 : i32
    %c0_i32_0 = arith.constant 0 : i32
    %c0_i32_1 = arith.constant 0 : i32
    return %arg0, %c0_i32, %c0_i32_0 : i32, i32, i32
  }
  func.func @transform_3(%arg0: i32) -> (i32, i32) {
    %c0_i32 = arith.constant 0 : i32
    %c0_i32_0 = arith.constant 0 : i32
    %c0_i32_1 = arith.constant 0 : i32
    return %c0_i32, %c0_i32_0 : i32, i32
  }
  func.func @transform_4(%arg0: i32) -> (i32, i32) {
    %c0_i32 = arith.constant 0 : i32
    %c0_i32_0 = arith.constant 0 : i32
    %c0_i32_1 = arith.constant 0 : i32
    return %c0_i32, %c0_i32_0 : i32, i32
  }
  func.func @transform_5(%arg0: i32) -> (i32, i32) {
    %c0_i32 = arith.constant 0 : i32
    %c0_i32_0 = arith.constant 0 : i32
    %c0_i32_1 = arith.constant 0 : i32
    return %c0_i32, %c0_i32_0 : i32, i32
  }
  func.func @transform_6(%arg0: i32) -> (i32, i32) {
    %c0_i32 = arith.constant 0 : i32
    %c0_i32_0 = arith.constant 0 : i32
    %c0_i32_1 = arith.constant 0 : i32
    return %c0_i32, %c0_i32_0 : i32, i32
  }
  func.func @transform_7(%arg0: i32) -> (i32, i32) {
    %c0_i32 = arith.constant 0 : i32
    %c0_i32_0 = arith.constant 0 : i32
    %c0_i32_1 = arith.constant 0 : i32
    return %c0_i32, %c0_i32_0 : i32, i32
  }
  func.func @transform_8(%arg0: i32) -> (i32, i32) {
    %c0_i32 = arith.constant 0 : i32
    %c0_i32_0 = arith.constant 0 : i32
    %c0_i32_1 = arith.constant 0 : i32
    return %c0_i32, %c0_i32_0 : i32, i32
  }
  func.func @transform_9(%arg0: i32) -> (i32, i32) {
    %c0_i32 = arith.constant 0 : i32
    %c0_i32_0 = arith.constant 0 : i32
    return %arg0, %c0_i32 : i32, i32
  }
}

</mosaic_0001>

<bundles_post_ra>
// kernel: tpu_custom_call.1
= control target key start
LH: loop header
LB: loop body
LE: loop exit
PB: predicated region body
PF: predicated region fallthrough
CT: control target
= control target key end

     0   :  { %14 = vsyncpa [#allocation3], 0  ;;  %s679_s0 = inlined_call_operand.hbm [shape: f32[2,32], index: 0, kind: input, shape index: {}]   ;;  %s680_s1 = inlined_call_operand.hbm [shape: f32[2,8,32], index: 1, kind: input, shape index: {}]   ;;  %s681_s2 = inlined_call_operand.hbm [shape: f32[2,8,32], index: 2, kind: input, shape index: {}]   ;;  %s682_s3 = inlined_call_operand.hbm [shape: f32[32,32], index: 3, kind: input, shape index: {}]   ;;  %s683_s4 = inlined_call_operand.hbm [shape: f32[32,32], index: 4, kind: input, shape index: {}]   ;;  %s684_s5 = inlined_call_operand.hbm [shape: f32[32,32], index: 5, kind: input, shape index: {}]   ;;  %s685_s6 = inlined_call_operand.vmem [shape: f32[1,32], index: 6, kind: input, shape index: {}]   ;;  %s686_s7 = inlined_call_operand.vmem [shape: f32[1,32], index: 7, kind: input, shape index: {}]   ;;  %s687_s8 = inlined_call_operand.vmem [shape: f32[1,32], index: 8, kind: input, shape index: {}]   ;;  %s688_s9 = inlined_call_operand.hbm [shape: f32[2,32], index: 9, kind: output, shape index: {}]  }
   0x1   :  { %15 = vsyncpa [#allocation6], 0 }
   0x2   :  { %16 = vsyncpa [#allocation9], 0 }
   0x3   :  { %17 = vsyncpa [#allocation12], 0  ;;  %s34_s11 = sshll.u32 %s680_s1, 4  ;;  %s35_s11 = int_to_ptr.hbm [resolvable:$true] %s34_s11 }
   0x4   :  { %18 = vsyncpa [#allocation4], 0  ;;  %s560_s12 = smov [#allocation5]   ;;  %s60_s16 = sshll.u32 %s682_s3, 4  ;;  %s61_s16 = int_to_ptr.hbm [resolvable:$true] %s60_s16 }
   0x5   :  { %s36_s13 = sshll.u32 %s560_s12, 4  ;;  %s561_s17 = smov 128   ;;  %s37_s13 = int_to_ptr.vmem [resolvable:$true] %s36_s13 }
   0x6   :  { %s562_s18 = smov 8   ;;  %s563_s19 = smov [#allocation8]  }
   0x7   :  { %42 = dma.hbm_to_vmem [thread:$0]  %s35_s11, 256, %s37_s13, [#allocation6], %s561_s17, %s561_s17, %s562_s18  }
   0x8   :  { %s62_s20 = sshll.u32 %s563_s19, 4  ;;  %s24_s22 = sshll.u32 %s679_s0, 4  ;;  %s63_s20 = int_to_ptr.vmem [resolvable:$true] %s62_s20  ;;  %s25_s22 = int_to_ptr.hbm [resolvable:$true] %s24_s22 }
   0x9   :  { %68 = dma.hbm_to_vmem [thread:$0]  %s61_s16, 512, %s63_s20, [#allocation9], %s561_s17, %s561_s17, %s562_s18  }
   0xa   :  { %s47_s24 = sshll.u32 %s681_s2, 4  ;;  %s564_s25 = smov [#allocation2]   ;;  %s48_s24 = int_to_ptr.hbm [resolvable:$true] %s47_s24 }
   0xb   :  { %s26_s26 = sshll.u32 %s564_s25, 4  ;;  %s565_s27 = smov [#allocation7]   ;;  %s27_s26 = int_to_ptr.vmem [resolvable:$true] %s26_s26 }
   0xc   :  { %29 = dma.hbm_to_vmem [thread:$0]  %s25_s22, 32, %s27_s26, [#allocation3]  }
   0xd   :  { %s49_s28 = sshll.u32 %s565_s27, 4  ;;  %s73_s0 = sshll.u32 %s683_s4, 4  ;;  %s50_s28 = int_to_ptr.vmem [resolvable:$true] %s49_s28  ;;  %s74_s0 = int_to_ptr.hbm [resolvable:$true] %s73_s0 }
   0xe   :  { %55 = dma.hbm_to_vmem [thread:$0]  %s48_s24, 256, %s50_s28, [#allocation6], %s561_s17, %s561_s17, %s562_s18  }
   0xf   :  { %s86_s2 = sshll.u32 %s684_s5, 4  ;;  %s566_s12 = smov [#allocation10]   ;;  %s87_s2 = int_to_ptr.hbm [resolvable:$true] %s86_s2 }
  0x10   :  { %s75_s13 = sshll.u32 %s566_s12, 4  ;;  %s567_s14 = smov [#allocation11]   ;;  %s76_s13 = int_to_ptr.vmem [resolvable:$true] %s75_s13 }
  0x11   :  { %81 = dma.hbm_to_vmem [thread:$0]  %s74_s0, 512, %s76_s13, [#allocation9], %s561_s17, %s561_s17, %s562_s18  }
  0x12   :  { %s88_s4 = sshll.u32 %s567_s14, 4  ;;  %s89_s4 = int_to_ptr.vmem [resolvable:$true] %s88_s4 }
  0x13   :  { %94 = dma.hbm_to_vmem [thread:$0]  %s87_s2, 512, %s89_s4, [#allocation12], %s561_s17, %s561_s17, %s562_s18  }
  0x14   :  { %550 = dma.done.wait [#allocation3], 32  }
  0x15   :  { %551 = vsyncadd [#allocation3], 4294967264 }
  0x16   :  { %552 = dma.done.wait [#allocation6], 512  }
  0x17   :  { %553 = vsyncadd [#allocation6], 4294966784 }
  0x18   :  { %554 = dma.done.wait [#allocation9], 1024  }
  0x19   :  { %555 = vsyncadd [#allocation9], 4294966272 }
  0x1a   :  { %556 = dma.done.wait [#allocation12], 512  }
  0x1b   :  { %557 = vsyncadd [#allocation12], 4294966784  ;;  %v133_v0 = vld [vmem:[#allocation8 + $0x18] sm:$0xff]  ;;  %v132_v1 = vld [vmem:[#allocation8 + $0x10] sm:$0xff]  ;;  %vm148_vm0 = vcmask 261120   ;;  %vm199_vm1 = vcmask 254976   ;;  %v232_v33 = vlaneseq }
  0x1c   :  { %164 = vmatpush.msra.mxu0 %v133_v0  ;;  %v137_v2 = vld [vmem:[#allocation10 + $0x18] sm:$0xff]  ;;  %v131_v3 = vld [vmem:[#allocation8 + $0x8] sm:$0xff]  ;;  %v136_v4 = vld [vmem:[#allocation10 + $0x10] sm:$0xff]  ;;  %v568_v25 = vmov 0   ;;  %vm236_vm2 = vcmask 1041409   ;;  %vm239_vm3 = vcmask 58368  }
  0x1d   :  { %187 = vmatpush.msra.mxu1 %v137_v2  ;;  %v130_v5 = vld [vmem:[#allocation8] sm:$0xff]  ;;  %v125_v6 = vld [vmem:[#allocation2] sm:$0x3]  ;;  %v135_v7 = vld [vmem:[#allocation10 + $0x8] sm:$0xff]  ;;  %370 = vset.pattern.permute.xlu1 %v568_v25  ;;  %v233_v34 = vand.u32 127, %v232_v33  ;;  %s569_s18 = smov [#allocation13]  }
  0x1e   :  { %165 = vmatpush.msra.mxu0 %v132_v1  ;;  %v134_v8 = vld [vmem:[#allocation10] sm:$0xff]  ;;  %v373_v9 = vld [vmem:[%s685_s6] ss:$0 sm:$0xff]  ;;  %v127_v19 = vld [vmem:[#allocation5 + $0x8] sm:$0xff]  ;;  %371 = vset.pattern.permute.xlu2 %v568_v25  ;;  %s342_s19 = sshll.u32 %s569_s18, 4  ;;  %s344_s1 = sshll.u32 %s688_s9, 4  ;;  %s343_s19 = int_to_ptr.vmem [resolvable:$true] %s342_s19  ;;  %s345_s1 = int_to_ptr.hbm [resolvable:$true] %s344_s1 }
  0x1f   :  { %188 = vmatpush.msra.mxu1 %v136_v4  ;;  %v374_v10 = vld [vmem:[%s686_s7] ss:$0 sm:$0xff]  ;;  %v126_v16 = vld [vmem:[#allocation5] sm:$0xff]  ;;  %372 = vset.pattern.permute.xlu0 %v568_v25  ;;  %v140_v57 = vld [vmem:[#allocation11 + $0x10] sm:$0xff] }
  0x20   :  { %166 = vmatpush.msra.mxu0 %v131_v3  ;;  %v141_v56 = vld [vmem:[#allocation11 + $0x18] sm:$0xff]  ;;  %v139_v58 = vld [vmem:[#allocation11 + $0x8] sm:$0xff]  ;;  %v138_v60 = vld [vmem:[#allocation11] sm:$0xff] }
  0x21   :  { %189 = vmatpush.msra.mxu1 %v135_v7  ;;  %328 = vmatpush.msra.mxu2 %v141_v56  ;;  %v129_v59 = vld [vmem:[#allocation7 + $0x8] sm:$0xff]  ;;  %v128_v61 = vld [vmem:[#allocation7] sm:$0xff] }
  0x22   :  { %167 = vmatpush.msra.mxu0 %v130_v5 }
  0x23   :  { %357 = vmatmul.msk.f32.vlgmr.msra.gmra.mxu0 %vm148_vm0, %v125_v6  ;;  %190 = vmatpush.msra.mxu1 %v134_v8 }
  0x24   :  { %329 = vmatpush.msra.mxu2 %v140_v57 }
  0x26   :  { %330 = vmatpush.msra.mxu2 %v139_v58 }
  0x28   :  { %331 = vmatpush.msra.mxu2 %v138_v60 }
  0xa0   :  { %v169_v11 = vpop.f32.mrf.mxu0 }
  0xa1   :  { %v170_v12 = vadd.f32 %v373_v9, %v169_v11 }
  0xa3   :  { %358 = vmatmul.msk.f32.vlgmr.msra.gmra.mxu1 %vm148_vm0, %v170_v12  ;;  %v198_v13 = vmul.f32 %v374_v10, %v170_v12 }
  0xa5   :  { %v200_v14 = vsel %vm199_vm1, %v198_v13, 0.0 }
  0xa6   :  { %201 = vadd.xlane.f32.xlu0 %v200_v14 }
 0x119   :  { %v202_v26 = vpop.xlane.xlu0 %201 }
 0x11a   :  { %v218_v27 = vperm.slane %v202_v26, 0  ;;  %v219_v29 = vperm.slane %v202_v26, 1 }
 0x120   :  { %v192_v15 = vpop.f32.mrf.mxu1 }
 0x121   :  { %v204_v17 = vrot.slane %v192_v15, 1  ;;  %v205_v18 = vperm.slane %v192_v15, 0 }
 0x123   :  { %v206_v20 = vperm.slane %v204_v17, 0  ;;  %v209_v21 = vmul.f32 %v205_v18, %v126_v16 }
 0x125   :  { %v211_v22 = vsel %vm148_vm0, %v209_v21, 0.0  ;;  %v210_v23 = vmul.f32 %v206_v20, %v127_v19 }
 0x126   :  { %212 = vadd.xlane.f32.xlu0 %v211_v22 }
 0x127   :  { %v214_v24 = vsel %vm148_vm0, %v210_v23, 0.0 }
 0x128   :  { %215 = vadd.xlane.f32.xlu1 %v214_v24 }
 0x199   :  { %v213_v28 = vpop.xlane.xlu0 %212 }
 0x19a   :  { %v222_v30 = vadd.f32 %v218_v27, %v213_v28 }
 0x19b   :  { %v216_v31 = vpop.xlane.xlu1 %215 }
 0x19c   :  { %v223_v32 = vadd.f32 %v219_v29, %v216_v31  ;;  %227 = vperm.xlu1 %370, %v222_v30  }
 0x19e   :  { %230 = vperm.xlu2 %371, %v223_v32  }
 0x1f8   :  { %v231_v35 = vpop.permute.xlu2 %230 }
 0x1f9   :  { %v235_v37 = vperm.slane %v231_v35, %v233_v34 }
 0x20e   :  { %v228_v36 = vpop.permute.xlu1 %227 }
 0x20f   :  { %v234_v38 = vperm.slane %v228_v36, %v233_v34 }
 0x211   :  { %v237_v39 = vsel %vm236_vm2, %v235_v37, %v234_v38 }
 0x212   :  { %v240_v40 = vsel %vm239_vm3, %v237_v39, -inf }
 0x213   :  { %241 = vmax.xlane.f32.xlu2 %v240_v40 }
 0x286   :  { %v242_v41 = vpop.xlane.xlu2 %241 }
 0x287   :  { %v244_v42 = vperm.slane %v242_v41, 0  ;;  %v245_v43 = vperm.slane %v242_v41, 1 }
 0x289   :  { %v248_v44 = vsub.f32 %v222_v30, %v244_v42  ;;  %v249_v45 = vsub.f32 %v223_v32, %v245_v43  ;;  %v375_v30 = vld [vmem:[%s687_s8] ss:$0 sm:$0xff] }
 0x28b   :  { %v250_v46 = vmul.f32 1.442695, %v248_v44  ;;  %v252_v47 = vmul.f32 1.442695, %v249_v45 }
 0x28d   :  { %376 = vpow2.f32 %v250_v46 }
 0x28e   :  { %378 = vpow2.f32 %v252_v47 }
 0x293   :  { %v377_v48 = vpop.eup %376 }
 0x294   :  { %v379_v49 = vpop.eup %378  ;;  %257 = vperm.xlu0 %372, %v377_v48  }
 0x295   :  { %260 = vperm.xlu1 %370, %v379_v49  }
 0x306   :  { %v258_v50 = vpop.permute.xlu0 %257 }
 0x307   :  { %v261_v51 = vpop.permute.xlu1 %260  ;;  %v262_v52 = vperm.slane %v258_v50, %v233_v34  ;;  %v271_v63 = vmul.f32 %v258_v50, %v128_v61 }
 0x308   :  { %v263_v53 = vperm.slane %v261_v51, %v233_v34  ;;  %v272_v62 = vmul.f32 %v261_v51, %v129_v59 }
 0x309   :  { %v273_v1 = vsel %vm148_vm0, %v271_v63, 0.0 }
 0x30a   :  { %v264_v54 = vsel %vm236_vm2, %v263_v53, %v262_v52  ;;  %v280_v0 = vsel %vm148_vm0, %v272_v62, 0.0  ;;  %v274_v3 = vrot.slane %v273_v1, 4 }
 0x30b   :  { %v266_v55 = vsel %vm239_vm3, %v264_v54, 0.0  ;;  %v281_v2 = vrot.slane %v280_v0, 4 }
 0x30c   :  { %267 = vadd.xlane.f32.xlu1 %v266_v55  ;;  %v275_v6 = vadd.f32 %v274_v3, %v273_v1 }
 0x30d   :  { %v282_v5 = vadd.f32 %v281_v2, %v280_v0 }
 0x30e   :  { %v276_v9 = vrot.slane %v275_v6, 2 }
 0x30f   :  { %v283_v7 = vrot.slane %v282_v5, 2 }
 0x310   :  { %v277_v14 = vadd.f32 %v276_v9, %v275_v6 }
 0x311   :  { %v284_v11 = vadd.f32 %v283_v7, %v282_v5 }
 0x312   :  { %v278_v20 = vrot.slane %v277_v14, 1 }
 0x313   :  { %v285_v17 = vrot.slane %v284_v11, 1 }
 0x314   :  { %v279_v25 = vadd.f32 %v278_v20, %v277_v14 }
 0x315   :  { %v286_v23 = vadd.f32 %v285_v17, %v284_v11 }
 0x37f   :  { %v268_v4 = vpop.xlane.xlu1 %267 }
 0x380   :  { %380 = vrcp.f32 %v268_v4  ;;  %v298_v13 = vand.u32 2147483648, %v268_v4  ;;  %v296_v16 = vand.u32 2147483647, %v268_v4  ;;  %vm292_vm5 = vweird.f32 %v268_v4 }
 0x382   :  { %v299_v19 = vor.u32 1.1754944e-38, %v298_v13  ;;  %vm297_vm7 = vcmp.eq.f32.partialorder %v296_v16, 8.507059e+37 }
 0x386   :  { %v381_v8 = vpop.eup %380 }
 0x387   :  { %v288_v10 = vmul.f32 %v381_v8, %v268_v4  ;;  %vm293_vm4 = vweird.f32 %v381_v8 }
 0x388   :  { %vm294_vm6 = vmor %vm292_vm5, %vm293_vm4 }
 0x389   :  { %v289_v12 = vsub.f32 1.0, %v288_v10 }
 0x38b   :  { %v290_v15 = vmul.f32 %v381_v8, %v289_v12 }
 0x38d   :  { %v291_v18 = vadd.f32 %v381_v8, %v290_v15 }
 0x38f   :  { %v295_v21 = vsel %vm294_vm6, %v381_v8, %v291_v18 }
 0x390   :  { %v300_v22 = vsel %vm297_vm7, %v299_v19, %v295_v21 }
 0x391   :  { %v302_v24 = vrot.slane %v300_v22, 1  ;;  %v305_v27 = vmul.f32 %v300_v22, %v279_v25 }
 0x393   :  { %v306_v26 = vmul.f32 %v302_v24, %v286_v23 }
 0x395   :  { %v312_v28 = vrot.slane %v306_v26, 7 }
 0x397   :  { %v313_v29 = vsel %vm236_vm2, %v312_v28, %v305_v27 }
 0x398   :  { %359 = vmatmul.msk.f32.vlgmr.msra.gmra.mxu2 %vm148_vm0, %v313_v29 }
 0x41b   :  { %v333_v31 = vpop.f32.mrf.mxu2 }
 0x41c   :  { %v334_v32 = vadd.f32 %v375_v30, %v333_v31 }
 0x41e   :  { %336 = vst.msk [vmem:[#allocation13] sm:$0x3] %vm199_vm1, %v334_v32 }
 0x41f   :  { %347 = dma.vmem_to_hbm [thread:$0]  %s343_s19, 32, %s345_s1, [#allocation4]  }
 0x420   :  { %558 = dma.done.wait [#allocation4], 32  }
 0x421   :  { %559 = vsyncadd [#allocation4], 4294967264 }
 0x422   :  { %352 = vsyncpa [#allocation3], 1 }
 0x423   :  { %353 = vsyncpa [#allocation6], 1 }
 0x424   :  { %354 = vsyncpa [#allocation9], 1 }
 0x425   :  { %355 = vsyncpa [#allocation12], 1 }
 0x426   :  { %356 = vsyncpa [#allocation4], 1 }

</bundles_post_ra>
